<compile_context>
chip_gen: v7x
topology: tpu7x:2x2x1
jax: 0.10.0
libtpu: 0.0.40
codegen_flags: <defaults>
</compile_context>

<pallas_src>
import math
import functools

import jax
import jax.numpy as jnp
from jax.experimental import pallas as pl
from jax.experimental.pallas import tpu as pltpu

VMEM = pltpu.MemorySpace.VMEM
SMEM = pltpu.MemorySpace.SMEM

# Tile targets (bf16 operands, f32 accumulator).  256/512 keeps the 2x256^2
# MXU of v6e/v7x full while staying far under the ~32 MiB scoped VMEM budget
# (and v7x's 64 MiB physical VMEM).  _pick_tile falls back to the full dim
# when the dim is small or not divisible (allowed by the (8,128) rule).
_TM, _TN, _TK = 256, 512, 512
_VMEM_LIMIT = 48 * 1024 * 1024


def _pick_tile(dim, target, base):
    if dim <= target:
        return dim
    t = (target // base) * base
    while t >= base:
        if dim % t == 0:
            return t
        t -= base
    return dim


# ----------------------------------------------------------------------------
# Pallas kernels
# ----------------------------------------------------------------------------
def _make_matmul_kernel_acc(has_bias, has_residual, activation):
    """Tiled matmul, grid=(M/tm, N/tn, K/tk), f32 accumulator in VMEM scratch.

    Optional fused bias add, QuickGELU, and residual add in the epilogue.
    """

    def kernel(*refs):
        refs = list(refs)
        x_ref = refs.pop(0)
        w_ref = refs.pop(0)
        bias_ref = refs.pop(0) if has_bias else None
        res_ref = refs.pop(0) if has_residual else None
        o_ref = refs.pop(0)
        acc_ref = refs.pop(0)

        @pl.when(pl.program_id(2) == 0)
        def _init():
            acc_ref[...] = jnp.zeros_like(acc_ref)

        acc_ref[...] += jnp.dot(
            x_ref[...], w_ref[...], preferred_element_type=jnp.float32
        )

        @pl.when(pl.program_id(2) == pl.num_programs(2) - 1)
        def _finalize():
            y = acc_ref[...]
            if has_bias:
                y = y + bias_ref[...]
            if activation == "quick_gelu":
                y = y * jax.nn.sigmoid(1.702 * y)  # CLIP QuickGELU (f32)
            if has_residual:
                y = y + res_ref[...].astype(jnp.float32)
            o_ref[...] = y.astype(o_ref.dtype)

    return kernel


def _make_matmul_kernel_fast(has_bias, has_residual, activation):
    """Single-K-tile matmul (grid=(M/tm, N/tn)): no scratch, no pl.when."""

    def kernel(*refs):
        refs = list(refs)
        x_ref = refs.pop(0)
        w_ref = refs.pop(0)
        bias_ref = refs.pop(0) if has_bias else None
        res_ref = refs.pop(0) if has_residual else None
        o_ref = refs.pop(0)

        y = jnp.dot(x_ref[...], w_ref[...], preferred_element_type=jnp.float32)
        if has_bias:
            y = y + bias_ref[...]
        if activation == "quick_gelu":
            y = y * jax.nn.sigmoid(1.702 * y)
        if has_residual:
            y = y + res_ref[...].astype(jnp.float32)
        o_ref[...] = y.astype(o_ref.dtype)

    return kernel


def _make_ln_matmul_kernel(has_bias, activation):
    """LayerNorm fused with the following matmul.

    Grid=(M/tm, N/tn); the full K (feature) dim is kept in the block so the
    LN statistics are exact.  LN math in f32, matmul in bf16 on the MXU.
    """

    def kernel(*refs):
        refs = list(refs)
        x_ref = refs.pop(0)
        g_ref = refs.pop(0)
        b_ref = refs.pop(0)
        w_ref = refs.pop(0)
        bias_ref = refs.pop(0) if has_bias else None
        o_ref = refs.pop(0)

        x = x_ref[...].astype(jnp.float32)
        mean = jnp.mean(x, axis=-1, keepdims=True)
        var = jnp.mean(jnp.square(x - mean), axis=-1, keepdims=True)
        xn = (x - mean) * jax.lax.rsqrt(var + 1e-5)
        xn = (xn * g_ref[...] + b_ref[...]).astype(w_ref.dtype)

        y = jnp.dot(xn, w_ref[...], preferred_element_type=jnp.float32)
        if has_bias:
            y = y + bias_ref[...]
        if activation == "quick_gelu":
            y = y * jax.nn.sigmoid(1.702 * y)
        o_ref[...] = y.astype(o_ref.dtype)

    return kernel


def _make_layernorm_kernel(has_add):
    """Plain LayerNorm, with an optional fused elementwise add (pos embedding)."""

    def kernel(*refs):
        refs = list(refs)
        x_ref = refs.pop(0)
        a_ref = refs.pop(0) if has_add else None
        g_ref = refs.pop(0)
        b_ref = refs.pop(0)
        o_ref = refs.pop(0)

        x = x_ref[...].astype(jnp.float32)
        if has_add:
            x = x + a_ref[...].astype(jnp.float32)
        mean = jnp.mean(x, axis=-1, keepdims=True)
        var = jnp.mean(jnp.square(x - mean), axis=-1, keepdims=True)
        xn = (x - mean) * jax.lax.rsqrt(var + 1e-5)
        o_ref[...] = (xn * g_ref[...] + b_ref[...]).astype(o_ref.dtype)

    return kernel


def _attn_proj_kernel(qkv_ref, res_ref, w_ref, b_ref, o_ref, *,
                      n_heads, dh, scale, causal):
    """Fused multi-head attention + output projection + residual add.

    One batch element per grid step.  Input block: (1, S, 3*H*Dh) packed
    [q | k | v], head-major within each.  Softmax in f32, PV and out-proj on
    the MXU, bias + residual epilogue in f32, lane-dense (1, S, H*Dh) store.
    Causal mask built in-kernel with broadcasted_iota (no (S,S) mask DMA).
    """
    S = qkv_ref.shape[1]
    D = n_heads * dh
    qkv = qkv_ref[0]  # (S, 3D) in bf16

    if causal:
        row = jax.lax.broadcasted_iota(jnp.int32, (S, S), 0)
        col = jax.lax.broadcasted_iota(jnp.int32, (S, S), 1)
        keep = col <= row

    outs = []
    for h in range(n_heads):
        qh = qkv[:, h * dh:(h + 1) * dh]
        kh = qkv[:, D + h * dh:D + (h + 1) * dh]
        vh = qkv[:, 2 * D + h * dh:2 * D + (h + 1) * dh]

        s = jax.lax.dot_general(
            qh, kh, (((1,), (1,)), ((), ())),
            preferred_element_type=jnp.float32,
        ) * scale
        if causal:
            s = jnp.where(keep, s, -1e9)
        s = s - jnp.max(s, axis=-1, keepdims=True)
        p = jnp.exp(s)
        p = p * pl.reciprocal(jnp.sum(p, axis=-1, keepdims=True), approx=True)
        outs.append(
            jnp.dot(p.astype(vh.dtype), vh, preferred_element_type=jnp.float32)
        )

    attn = jnp.concatenate(outs, axis=-1).astype(w_ref.dtype)   # (S, D) bf16
    y = jnp.dot(attn, w_ref[...], preferred_element_type=jnp.float32)
    y = y + b_ref[...]
    y = y + res_ref[0].astype(jnp.float32)
    o_ref[0] = y.astype(o_ref.dtype)


def _logits_kernel(img_ref, txt_ref, scale_ref, o_ref):
    img = img_ref[...].astype(jnp.float32)
    txt = txt_ref[...].astype(jnp.float32)
    img = img * jax.lax.rsqrt(
        jnp.maximum(jnp.sum(img * img, axis=-1, keepdims=True), 1e-12))
    txt = txt * jax.lax.rsqrt(
        jnp.maximum(jnp.sum(txt * txt, axis=-1, keepdims=True), 1e-12))
    logit_scale = jnp.exp(scale_ref[0, 0])
    o_ref[...] = logit_scale * jax.lax.dot_general(
        img, txt, (((1,), (1,)), ((), ())), preferred_element_type=jnp.float32
    )


# ----------------------------------------------------------------------------
# Pallas wrappers
# ----------------------------------------------------------------------------
def matmul(x, w, *, bias=None, residual=None, activation=None,
           out_dtype=jnp.bfloat16):
    """Tiled matmul with optional fused bias/activation/residual.

    Uses a scratch-free 2D-grid fast path when K fits in one tile, otherwise
    the 3D-grid K-accumulated path with an f32 VMEM accumulator.
    """
    M, K = x.shape
    N = w.shape[1]
    tm = _pick_tile(M, _TM, 8)
    tn = _pick_tile(N, _TN, 128)
    tk = _pick_tile(K, _TK, 128)
    gk = K // tk

    args = [x, w]
    if gk == 1:
        in_specs = [
            pl.BlockSpec((tm, K), lambda i, j: (i, 0)),
            pl.BlockSpec((K, tn), lambda i, j: (0, j)),
        ]
        if bias is not None:
            in_specs.append(pl.BlockSpec((1, tn), lambda i, j: (0, j)))
            args.append(bias.reshape(1, N).astype(jnp.float32))
        if residual is not None:
            in_specs.append(pl.BlockSpec((tm, tn), lambda i, j: (i, j)))
            args.append(residual)
        kern = _make_matmul_kernel_fast(bias is not None, residual is not None,
                                        activation)
        return pl.pallas_call(
            kern,
            out_shape=jax.ShapeDtypeStruct((M, N), out_dtype),
            grid=(M // tm, N // tn),
            in_specs=in_specs,
            out_specs=pl.BlockSpec((tm, tn), lambda i, j: (i, j)),
            compiler_params=pltpu.CompilerParams(
                dimension_semantics=("parallel", "parallel"),
                vmem_limit_bytes=_VMEM_LIMIT),
        )(*args)

    in_specs = [
        pl.BlockSpec((tm, tk), lambda i, j, k: (i, k)),
        pl.BlockSpec((tk, tn), lambda i, j, k: (k, j)),
    ]
    if bias is not None:
        in_specs.append(pl.BlockSpec((1, tn), lambda i, j, k: (0, j)))
        args.append(bias.reshape(1, N).astype(jnp.float32))
    if residual is not None:
        in_specs.append(pl.BlockSpec((tm, tn), lambda i, j, k: (i, j)))
        args.append(residual)

    kern = _make_matmul_kernel_acc(bias is not None, residual is not None,
                                   activation)
    return pl.pallas_call(
        kern,
        out_shape=jax.ShapeDtypeStruct((M, N), out_dtype),
        grid=(M // tm, N // tn, gk),
        in_specs=in_specs,
        out_specs=pl.BlockSpec((tm, tn), lambda i, j, k: (i, j)),
        scratch_shapes=[pltpu.VMEM((tm, tn), jnp.float32)],
        compiler_params=pltpu.CompilerParams(
            dimension_semantics=("parallel", "parallel", "arbitrary"),
            vmem_limit_bytes=_VMEM_LIMIT),
    )(*args)


def ln_matmul(x, g, b, w, *, bias=None, activation=None, out_dtype=jnp.bfloat16):
    """Fused LayerNorm + matmul (full K per block, tiled over M and N)."""
    M, K = x.shape
    N = w.shape[1]
    tm = _pick_tile(M, _TM, 8)
    tn = _pick_tile(N, _TN, 128)
    grid = (M // tm, N // tn)

    in_specs = [
        pl.BlockSpec((tm, K), lambda i, j: (i, 0)),
        pl.BlockSpec((1, K), lambda i, j: (0, 0)),
        pl.BlockSpec((1, K), lambda i, j: (0, 0)),
        pl.BlockSpec((K, tn), lambda i, j: (0, j)),
    ]
    args = [x,
            g.reshape(1, K).astype(jnp.float32),
            b.reshape(1, K).astype(jnp.float32),
            w]
    if bias is not None:
        in_specs.append(pl.BlockSpec((1, tn), lambda i, j: (0, j)))
        args.append(bias.reshape(1, N).astype(jnp.float32))

    kern = _make_ln_matmul_kernel(bias is not None, activation)
    return pl.pallas_call(
        kern,
        out_shape=jax.ShapeDtypeStruct((M, N), out_dtype),
        grid=grid,
        in_specs=in_specs,
        out_specs=pl.BlockSpec((tm, tn), lambda i, j: (i, j)),
        compiler_params=pltpu.CompilerParams(
            dimension_semantics=("parallel", "parallel"),
            vmem_limit_bytes=_VMEM_LIMIT),
    )(*args)


def layernorm(x, g, b, *, add=None, out_dtype=jnp.bfloat16):
    """LayerNorm with an optional fused elementwise add (e.g. pos embedding)."""
    M, D = x.shape
    tm = _pick_tile(M, _TM, 8)

    in_specs = [pl.BlockSpec((tm, D), lambda i: (i, 0))]
    args = [x]
    if add is not None:
        in_specs.append(pl.BlockSpec((tm, D), lambda i: (i, 0)))
        args.append(add)
    in_specs += [pl.BlockSpec((1, D), lambda i: (0, 0)),
                 pl.BlockSpec((1, D), lambda i: (0, 0))]
    args += [g.reshape(1, D).astype(jnp.float32),
             b.reshape(1, D).astype(jnp.float32)]

    return pl.pallas_call(
        _make_layernorm_kernel(add is not None),
        out_shape=jax.ShapeDtypeStruct((M, D), out_dtype),
        grid=(M // tm,),
        in_specs=in_specs,
        out_specs=pl.BlockSpec((tm, D), lambda i: (i, 0)),
        compiler_params=pltpu.CompilerParams(
            dimension_semantics=("parallel",),
            vmem_limit_bytes=_VMEM_LIMIT),
    )(*args)


def attention_block(qkv, x_res, proj_w, proj_b, n_heads, causal):
    """Fused MHA + out-projection + residual.  qkv: (B, S, 3D) -> (B, S, D)."""
    B, S, threeD = qkv.shape
    D = threeD // 3
    dh = D // n_heads
    kern = functools.partial(_attn_proj_kernel, n_heads=n_heads, dh=dh,
                             scale=1.0 / math.sqrt(dh), causal=causal)
    return pl.pallas_call(
        kern,
        out_shape=jax.ShapeDtypeStruct((B, S, D), qkv.dtype),
        grid=(B,),
        in_specs=[pl.BlockSpec((1, S, threeD), lambda b: (b, 0, 0)),
                  pl.BlockSpec((1, S, D), lambda b: (b, 0, 0)),
                  pl.BlockSpec((D, D), lambda b: (0, 0)),
                  pl.BlockSpec((1, D), lambda b: (0, 0))],
        out_specs=pl.BlockSpec((1, S, D), lambda b: (b, 0, 0)),
        compiler_params=pltpu.CompilerParams(
            dimension_semantics=("parallel",),
            vmem_limit_bytes=_VMEM_LIMIT),
    )(qkv, x_res, proj_w, proj_b.reshape(1, D).astype(jnp.float32))


def compute_logits(img_feats, txt_feats, logit_scale):
    B = img_feats.shape[0]
    C = txt_feats.shape[0]
    return pl.pallas_call(
        _logits_kernel,
        out_shape=jax.ShapeDtypeStruct((B, C), jnp.float32),
        in_specs=[pl.BlockSpec(memory_space=VMEM),
                  pl.BlockSpec(memory_space=VMEM),
                  pl.BlockSpec(memory_space=SMEM)],
        out_specs=pl.BlockSpec(memory_space=VMEM),
        compiler_params=pltpu.CompilerParams(vmem_limit_bytes=_VMEM_LIMIT),
    )(img_feats, txt_feats, logit_scale.reshape(1, 1).astype(jnp.float32))


# ----------------------------------------------------------------------------
# Transformer building blocks (glue orchestrating Pallas kernels)
# ----------------------------------------------------------------------------
def transformer_block(x, p, n_heads, causal):
    B, S, D = x.shape
    xf = x.reshape(B * S, D)
    # ln1 fused into QKV projection
    qkv = ln_matmul(xf, p["ln1_g"], p["ln1_b"], p["qkv_w"], bias=p["qkv_b"])
    # attention + out-projection + residual fused into one kernel
    x1 = attention_block(qkv.reshape(B, S, 3 * D), x, p["proj_w"], p["proj_b"],
                         n_heads, causal)
    x1f = x1.reshape(B * S, D)
    # ln2 fused into fc, QuickGELU fused into the matmul epilogue
    h = ln_matmul(x1f, p["ln2_g"], p["ln2_b"], p["fc_w"], bias=p["fc_b"],
                  activation="quick_gelu")
    # c_proj with residual add fused
    x2 = matmul(h, p["cproj_w"], bias=p["cproj_b"], residual=x1f)
    return x2.reshape(B, S, D)


# ----------------------------------------------------------------------------
# CLIP image / text encoders and PromptLearner
# ----------------------------------------------------------------------------
def encode_image(image, vp):
    # image: NCHW (PyTorch conv layout). Patchify + matmul == conv1.
    B, C, H, W = image.shape
    P = vp["patch"]
    Gh, Gw = H // P, W // P
    patches = (
        image.reshape(B, C, Gh, P, Gw, P)
        .transpose(0, 2, 4, 1, 3, 5)
        .reshape(B * Gh * Gw, C * P * P)
        .astype(jnp.bfloat16)
    )
    width = vp["conv_w"].shape[1]
    x = matmul(patches, vp["conv_w"])                       # conv1 has no bias
    x = x.reshape(B, Gh * Gw, width)
    cls = jnp.broadcast_to(vp["class_emb"].reshape(1, 1, width), (B, 1, width))
    x = jnp.concatenate([cls, x], axis=1)
    S = x.shape[1]
    # positional embedding add fused into ln_pre
    pos = jnp.broadcast_to(vp["pos_emb"][None], (B, S, width)).reshape(B * S, width)
    x = layernorm(x.reshape(B * S, width), vp["ln_pre_g"], vp["ln_pre_b"], add=pos)
    x = x.reshape(B, S, width)
    for blk in vp["blocks"]:
        x = transformer_block(x, blk, vp["heads"], causal=False)
    # ln_post fused with the output projection (bias-free)
    feats = ln_matmul(x[:, 0, :], vp["ln_post_g"], vp["ln_post_b"],
                      vp["proj_w"], out_dtype=jnp.float32)
    return feats


def encode_text(prompts, tokenized_prompts, tp):
    n_cls, S, D = prompts.shape
    x = prompts + tp["pos_emb"][None]
    for blk in tp["blocks"]:
        x = transformer_block(x, blk, tp["heads"], causal=True)
    # EOT gather (cheap XLA gather), then ln_final fused with text_projection.
    eot = jnp.argmax(tokenized_prompts, axis=-1)
    x_eot = x[jnp.arange(n_cls), eot]                       # (n_cls, D)
    feats = ln_matmul(x_eot, tp["ln_final_g"], tp["ln_final_b"],
                      tp["text_proj"], out_dtype=jnp.float32)
    return feats


def prompt_learner_forward(pp):
    # class_token_position == "end":  [prefix | ctx | suffix]
    n_cls = pp["token_prefix"].shape[0]
    ctx = pp["ctx"]
    if ctx.ndim == 2:
        ctx = jnp.broadcast_to(ctx[None], (n_cls,) + ctx.shape)
    return jnp.concatenate([pp["token_prefix"], ctx, pp["token_suffix"]], axis=1)


def custom_clip_forward(params, image):
    prompts = prompt_learner_forward(params["prompt"])
    image_features = encode_image(image, params["visual"])
    text_features = encode_text(prompts, params["prompt"]["tokenized_prompts"],
                                params["text"])
    # normalization + logit_scale.exp() * img @ txt.T fused in one Pallas kernel
    return compute_logits(image_features, text_features, params["logit_scale"])


# ----------------------------------------------------------------------------
# Deterministic parameter initialization (synthetic, not a checkpoint)
# ----------------------------------------------------------------------------
def _normal(key, shape, std=0.02, dtype=jnp.bfloat16):
    return (std * jax.random.normal(key, shape, dtype=jnp.float32)).astype(dtype)


def _init_block(key, width, hidden):
    ks = jax.random.split(key, 4)
    return dict(
        ln1_g=jnp.ones((width,), jnp.float32), ln1_b=jnp.zeros((width,), jnp.float32),
        qkv_w=_normal(ks[0], (width, 3 * width)), qkv_b=jnp.zeros((3 * width,), jnp.float32),
        proj_w=_normal(ks[1], (width, width)), proj_b=jnp.zeros((width,), jnp.float32),
        ln2_g=jnp.ones((width,), jnp.float32), ln2_b=jnp.zeros((width,), jnp.float32),
        fc_w=_normal(ks[2], (width, hidden)), fc_b=jnp.zeros((hidden,), jnp.float32),
        cproj_w=_normal(ks[3], (hidden, width)), cproj_b=jnp.zeros((width,), jnp.float32),
    )


def init_params(key, *, n_cls=4, n_ctx=4, ctx_dim=128, seq_len=16,
                img_size=32, patch=8, v_width=128, layers=2, heads=4,
                embed_dim=128):
    keys = jax.random.split(key, 16)
    grid = img_size // patch
    n_tokens_img = grid * grid + 1

    visual = dict(
        patch=patch, heads=heads,
        conv_w=_normal(keys[0], (3 * patch * patch, v_width)),   # conv1, no bias
        class_emb=_normal(keys[1], (v_width,)),
        pos_emb=_normal(keys[2], (n_tokens_img, v_width)),
        ln_pre_g=jnp.ones((v_width,), jnp.float32), ln_pre_b=jnp.zeros((v_width,), jnp.float32),
        blocks=[_init_block(k, v_width, 4 * v_width)
                for k in jax.random.split(keys[3], layers)],
        ln_post_g=jnp.ones((v_width,), jnp.float32), ln_post_b=jnp.zeros((v_width,), jnp.float32),
        proj_w=_normal(keys[4], (v_width, embed_dim)),
    )

    text = dict(
        heads=heads,
        pos_emb=_normal(keys[5], (seq_len, ctx_dim)),
        blocks=[_init_block(k, ctx_dim, 4 * ctx_dim)
                for k in jax.random.split(keys[6], layers)],
        ln_final_g=jnp.ones((ctx_dim,), jnp.float32), ln_final_b=jnp.zeros((ctx_dim,), jnp.float32),
        text_proj=_normal(keys[7], (ctx_dim, embed_dim)),
    )

    # TODO(synk): real CLIP tokenization / token_embedding lookup has no Pallas
    # equivalent here; we synthesize the embedded prefix/suffix buffers and
    # integer tokenized prompts directly (same shapes/semantics as the
    # registered buffers in PromptLearner).
    name_lens = [1, 2, 3, 2][:n_cls]
    rows = []
    for nl in name_lens:
        row = [49406] + [400 + j for j in range(n_ctx + nl)] + [49407]
        row = row + [0] * (seq_len - len(row))
        rows.append(row[:seq_len])
    tokenized_prompts = jnp.array(rows, dtype=jnp.int32)

    prompt = dict(
        ctx=_normal(keys[8], (n_ctx, ctx_dim)),   # generic (non-CSC) context, std=0.02
        token_prefix=_normal(keys[9], (n_cls, 1, ctx_dim)),
        token_suffix=_normal(keys[10], (n_cls, seq_len - 1 - n_ctx, ctx_dim)),
        tokenized_prompts=tokenized_prompts,
    )

    return dict(
        visual=visual,
        text=text,
        prompt=prompt,
        logit_scale=jnp.array(math.log(1.0 / 0.07), jnp.float32),
    )


# ----------------------------------------------------------------------------
if __name__ == "__main__":
    key = jax.random.PRNGKey(0)
    pkey, xkey = jax.random.split(key)

    params = init_params(pkey)

    # image: NCHW, small synthetic shape consistent with the ViT image encoder
    image = jax.random.normal(xkey, (2, 3, 32, 32), dtype=jnp.float32)

    logits = custom_clip_forward(params, image)   # (batch=2, n_cls=4)
    logits = jax.block_until_ready(logits)

    assert logits.shape == (2, 4)
    assert bool(jnp.all(jnp.isfinite(logits)))
    print("KERNEL_OK")
</pallas_src>

<mosaic_0001>
module attributes {stable_mosaic.version = 11 : i64} {
  func.func @kernel(%arg0: i32, %arg1: i32, %arg2: memref<32x192xbf16, #tpu.memory_space<vmem>>, %arg3: memref<192x128xbf16, #tpu.memory_space<vmem>>, %arg4: memref<32x128xbf16, #tpu.memory_space<vmem>>) attributes {dimension_semantics = [#tpu.dimension_semantics<parallel>, #tpu.dimension_semantics<parallel>], iteration_bounds = array<i64: 1, 1>, scalar_prefetch = 0 : i64, scratch_operands = 0 : i64, tpu.core_type = #tpu.core_type<tc>, window_params = [{transform_indices = @transform_0, window_bounds = array<i64: 32, 192>}, {transform_indices = @transform_1, window_bounds = array<i64: 192, 128>}, {transform_indices = @transform_2, window_bounds = array<i64: 32, 128>}]} {
    %c0 = arith.constant 0 : index
    %c0_0 = arith.constant 0 : index
    %0 = vector.load %arg2[%c0, %c0_0] : memref<32x192xbf16, #tpu.memory_space<vmem>>, vector<32x192xbf16>
    %c0_1 = arith.constant 0 : index
    %c0_2 = arith.constant 0 : index
    %1 = vector.load %arg3[%c0_1, %c0_2] : memref<192x128xbf16, #tpu.memory_space<vmem>>, vector<192x128xbf16>
    %cst = arith.constant dense<0.000000e+00> : vector<32x128xf32>
    %2 = tpu.matmul %0, %1, %cst {dimension_numbers = #tpu.dot_dimension_numbers<[1], [0], [0], [1], [0, 0, 1, 1], [], []>} : vector<32x192xbf16>, vector<192x128xbf16>, vector<32x128xf32> -> vector<32x128xf32>
    %3 = arith.truncf %2 : vector<32x128xf32> to vector<32x128xbf16>
    %c0_3 = arith.constant 0 : index
    %c0_4 = arith.constant 0 : index
    %4 = vector.load %arg4[%c0_3, %c0_4] : memref<32x128xbf16, #tpu.memory_space<vmem>>, vector<32x128xbf16>
    tpu.vector_store %arg4[%c0_3, %c0_4], %3 {strides = array<i32>} : memref<32x128xbf16, #tpu.memory_space<vmem>>, vector<32x128xbf16>,
    return
  }
  func.func @transform_0(%arg0: i32, %arg1: i32) -> (i32, i32) {
    %c0_i32 = arith.constant 0 : i32
    %c0_i32_0 = arith.constant 0 : i32
    return %arg0, %c0_i32 : i32, i32
  }
  func.func @transform_1(%arg0: i32, %arg1: i32) -> (i32, i32) {
    %c0_i32 = arith.constant 0 : i32
    %c0_i32_0 = arith.constant 0 : i32
    return %c0_i32, %arg1 : i32, i32
  }
  func.func @transform_2(%arg0: i32, %arg1: i32) -> (i32, i32) {
    %c0_i32 = arith.constant 0 : i32
    return %arg0, %arg1 : i32, i32
  }
}

</mosaic_0001>

<bundles_post_ra>
// kernel: tpu_custom_call.1
= control target key start
LH: loop header
LB: loop body
LE: loop exit
PB: predicated region body
PF: predicated region fallthrough
CT: control target
= control target key end

     0   :  { %7 = vsyncpa [#allocation3], 0  ;;  %s477_s0 = inlined_call_operand.hbm [shape: bf16[32,192], index: 0, kind: input, shape index: {}]   ;;  %s478_s1 = inlined_call_operand.hbm [shape: bf16[192,128], index: 1, kind: input, shape index: {}]   ;;  %s479_s2 = inlined_call_operand.hbm [shape: bf16[32,128], index: 2, kind: output, shape index: {}]  }
   0x1   :  { %8 = vsyncpa [#allocation6], 0 }
   0x2   :  { %9 = vsyncpa [#allocation4], 0  ;;  %s412_s9 = smov [#allocation2]   ;;  %s340_s13 = scalar_lea.hbm %s477_s0, 512 }
   0x3   :  { %s15_s10 = sshll.u32 %s412_s9, 4  ;;  %p341_p0 = scmp.ne.s32.totalorder %s477_s0, %s340_s13  ;;  %s16_s10 = int_to_ptr.vmem [resolvable:$true] %s15_s10 }
   0x4   :  { %p344_p1 = scmp.lt.u32.totalorder %s340_s13, %s477_s0 }
   0x6   :  { %p346_p2 = pnand %p344_p1, %p341_p0 }
   0x8   :  { %349 = shalt.err (!%p346_p2)
}
   0x9   :  { %s350_s18 = scalar_lea.vmem %s16_s10, 512  ;;  %p355_p4 = scmp.lt.s32.totalorder %s16_s10, %s16_s10 }
   0xa   :  { %p351_p3 = scmp.ne.s32.totalorder %s16_s10, %s350_s18  ;;  %p356_p5 = scmp.lt.s32.totalorder %s350_s18, %s350_s18 }
   0xc   :  { %p357_p6 = por %p356_p5, %p355_p4 }
   0xe   :  { %p358_p7 = pnand %p357_p6, %p351_p3 }
  0x10   :  { %361 = shalt.err (!%p358_p7)
}
  0x11   :  { %s413_s19 = smov 128   ;;  %s414_s20 = smov 8  }
  0x12   :  { %21 = dma.hbm_to_vmem [thread:$0]  %s477_s0, 512, %s16_s10, [#allocation3], %s413_s19, %s413_s19, %s414_s20  }
  0x13   :  { %s415_s23 = smov [#allocation5]   ;;  %s362_s27 = scalar_lea.hbm %s478_s1, 1536 }
  0x14   :  { %s27_s24 = sshll.u32 %s415_s23, 4  ;;  %p363_p8 = scmp.ne.s32.totalorder %s478_s1, %s362_s27  ;;  %s28_s24 = int_to_ptr.vmem [resolvable:$true] %s27_s24 }
  0x15   :  { %p366_p9 = scmp.lt.u32.totalorder %s362_s27, %s478_s1 }
  0x17   :  { %p368_p10 = pnand %p366_p9, %p363_p8 }
  0x19   :  { %371 = shalt.err (!%p368_p10)
}
  0x1a   :  { %s372_s4 = scalar_lea.vmem %s28_s24, 1536  ;;  %p377_p12 = scmp.lt.s32.totalorder %s28_s24, %s28_s24 }
  0x1b   :  { %p373_p11 = scmp.ne.s32.totalorder %s28_s24, %s372_s4  ;;  %p378_p13 = scmp.lt.s32.totalorder %s372_s4, %s372_s4 }
  0x1d   :  { %p379_p0 = por %p378_p13, %p377_p12 }
  0x1f   :  { %p380_p1 = pnand %p379_p0, %p373_p11 }
  0x21   :  { %383 = shalt.err (!%p380_p1)
}
  0x22   :  { %s416_s0 = smov 64   ;;  %s417_s5 = smov 4  }
  0x23   :  { %33 = dma.hbm_to_vmem [thread:$0]  %s478_s1, 1536, %s28_s24, [#allocation6], %s416_s0, %s416_s0, %s417_s5  }
  0x24   :  { %406 = dma.done.wait [#allocation3], 512  }
  0x25   :  { %407 = vsyncadd [#allocation3], 4294966784 }
  0x26   :  { %408 = dma.done.wait [#allocation6], 1536  }
  0x27   :  { %409 = vsyncadd [#allocation6], 4294965760  ;;  %v418_v0 = vmov 0   ;;  %v322_v1 = vld [vmem:[#allocation5] sm:$0xff]   ;;  %v323_v2 = vld [vmem:[#allocation5 + $0x8] sm:$0xff]   ;;  %vm159_vm0 = vcmask 523264  }
  0x28   :  { %166 = vmatprep.subr.bf16.mxu0 %v418_v0  ;;  %290 = vmatprep.subr.bf16.mxu1 %v418_v0  ;;  %v324_v3 = vld [vmem:[#allocation5 + $0x10] sm:$0xff]   ;;  %v325_v4 = vld [vmem:[#allocation5 + $0x18] sm:$0xff]   ;;  %v336_v5 = vld [vmem:[#allocation2 + $0x4] ss:$8 sps:$4 sm:$0xff]   ;;  %s419_s1 = smov [#allocation7]  }
  0x29   :  { %167 = vmatpush1.bf16.msra.mxu0 %v322_v1  ;;  %302 = vmatpush1.bf16.msra.mxu1 %v322_v1  ;;  %v326_v6 = vld [vmem:[#allocation5 + $0x20] sm:$0xff]   ;;  %v339_v7 = vld [vmem:[#allocation2 + $0x14] ss:$8 sps:$4 sm:$0xff]   ;;  %v327_v8 = vld [vmem:[#allocation5 + $0x28] sm:$0xff]   ;;  %s240_s8 = sshll.u32 %s419_s1, 4  ;;  %s241_s8 = int_to_ptr.vmem [resolvable:$true] %s240_s8 }
  0x2a   :  { %168 = vmatprep.subr.bf16.mxu0 %v418_v0  ;;  %291 = vmatprep.subr.bf16.mxu1 %v418_v0  ;;  %v328_v9 = vld [vmem:[#allocation5 + $0x30] sm:$0xff]   ;;  %v329_v10 = vld [vmem:[#allocation5 + $0x38] sm:$0xff]   ;;  %v330_v11 = vld [vmem:[#allocation5 + $0x40] sm:$0xff]   ;;  %s384_s9 = scalar_lea.vmem %s241_s8, 256  ;;  %p389_p3 = scmp.lt.s32.totalorder %s241_s8, %s241_s8 }
  0x2b   :  { %269 = vmatprep.mubr.msk.bf16.mxu0 %vm159_vm0, %v336_v5  ;;  %270 = vmatprep.mubr.msk.bf16.mxu1 %vm159_vm0, %v339_v7  ;;  %v331_v12 = vld [vmem:[#allocation5 + $0x48] sm:$0xff]   ;;  %v332_v13 = vld [vmem:[#allocation5 + $0x50] sm:$0xff]   ;;  %v333_v14 = vld [vmem:[#allocation5 + $0x58] sm:$0xff]   ;;  %p385_p2 = scmp.ne.s32.totalorder %s241_s8, %s384_s9  ;;  %p390_p4 = scmp.lt.s32.totalorder %s384_s9, %s384_s9 }
  0x2c   :  { %v334_v15 = vld [vmem:[#allocation2] ss:$8 sps:$4 sm:$0xff]   ;;  %v337_v16 = vld [vmem:[#allocation2 + $0x10] ss:$8 sps:$4 sm:$0xff]  }
  0x2d   :  { %169 = vmatpush1.bf16.msra.mxu0 %v323_v2  ;;  %303 = vmatpush1.bf16.msra.mxu1 %v323_v2  ;;  %p391_p5 = por %p390_p4, %p389_p3 }
  0x2e   :  { %170 = vmatprep.subr.bf16.mxu0 %v418_v0  ;;  %292 = vmatprep.subr.bf16.mxu1 %v418_v0 }
  0x2f   :  { %p392_p6 = pnand %p391_p5, %p385_p2 }
  0x31   :  { %171 = vmatpush1.bf16.msra.mxu0 %v324_v3  ;;  %304 = vmatpush1.bf16.msra.mxu1 %v324_v3 }
  0x32   :  { %172 = vmatprep.subr.bf16.mxu0 %v418_v0  ;;  %293 = vmatprep.subr.bf16.mxu1 %v418_v0 }
  0x35   :  { %173 = vmatpush1.bf16.msra.mxu0 %v325_v4  ;;  %305 = vmatpush1.bf16.msra.mxu1 %v325_v4 }
  0x36   :  { %174 = vmatprep.subr.bf16.mxu0 %v418_v0  ;;  %294 = vmatprep.subr.bf16.mxu1 %v418_v0 }
  0x39   :  { %175 = vmatpush1.bf16.msra.mxu0 %v326_v6  ;;  %306 = vmatpush1.bf16.msra.mxu1 %v326_v6 }
  0x3a   :  { %176 = vmatprep.subr.bf16.mxu0 %v418_v0  ;;  %295 = vmatprep.subr.bf16.mxu1 %v418_v0 }
  0x3d   :  { %177 = vmatpush1.bf16.msra.mxu0 %v327_v8  ;;  %307 = vmatpush1.bf16.msra.mxu1 %v327_v8 }
  0x3e   :  { %178 = vmatprep.subr.bf16.mxu0 %v418_v0  ;;  %296 = vmatprep.subr.bf16.mxu1 %v418_v0 }
  0x41   :  { %179 = vmatpush1.bf16.msra.mxu0 %v328_v9  ;;  %308 = vmatpush1.bf16.msra.mxu1 %v328_v9 }
  0x42   :  { %180 = vmatprep.subr.bf16.mxu0 %v418_v0  ;;  %297 = vmatprep.subr.bf16.mxu1 %v418_v0 }
  0x45   :  { %181 = vmatpush1.bf16.msra.mxu0 %v329_v10  ;;  %309 = vmatpush1.bf16.msra.mxu1 %v329_v10 }
  0x46   :  { %182 = vmatprep.subr.bf16.mxu0 %v418_v0  ;;  %298 = vmatprep.subr.bf16.mxu1 %v418_v0 }
  0x49   :  { %183 = vmatpush1.bf16.msra.mxu0 %v330_v11  ;;  %310 = vmatpush1.bf16.msra.mxu1 %v330_v11 }
  0x4a   :  { %184 = vmatprep.subr.bf16.mxu0 %v418_v0  ;;  %299 = vmatprep.subr.bf16.mxu1 %v418_v0 }
  0x4d   :  { %185 = vmatpush1.bf16.msra.mxu0 %v331_v12  ;;  %311 = vmatpush1.bf16.msra.mxu1 %v331_v12 }
  0x4e   :  { %186 = vmatprep.subr.bf16.mxu0 %v418_v0  ;;  %300 = vmatprep.subr.bf16.mxu1 %v418_v0 }
  0x51   :  { %187 = vmatpush1.bf16.msra.mxu0 %v332_v13  ;;  %312 = vmatpush1.bf16.msra.mxu1 %v332_v13 }
  0x52   :  { %188 = vmatprep.subr.bf16.mxu0 %v418_v0  ;;  %301 = vmatprep.subr.bf16.mxu1 %v418_v0 }
  0x55   :  { %189 = vmatpush1.bf16.msra.mxu0 %v333_v14  ;;  %313 = vmatpush1.bf16.msra.mxu1 %v333_v14 }
  0x58   :  { %199 = vmatmul.mubr.bf16.vlgmr.msra.gmra.mrb[0].mxu0 %v334_v15  ;;  %207 = vmatmul.mubr.bf16.vlgmr.msra.gmra.mrb[0].mxu1 %v337_v16 }
 0x12b   :  { %v200_v17 = vpop.f32.mrb[0].mxu0  ;;  %v208_v18 = vpop.f32.mrb[0].mxu1 }
 0x12c   :  { %v202_v19 = vpop.f32.mrb[1].mxu0  ;;  %v210_v20 = vpop.f32.mrb[1].mxu1 }
 0x12d   :  { %v203_v21 = vpop.f32.mrb[2].mxu0  ;;  %v211_v22 = vpop.f32.mrb[2].mxu1 }
 0x12e   :  { %v282_v23 = vpack.c.bf16 %v203_v21, %v200_v17  ;;  %v287_v24 = vpack.c.bf16 %v211_v22, %v208_v18  ;;  %v205_v25 = vpop.f32.mrb[3].mxu0  ;;  %v213_v26 = vpop.f32.mrb[3].mxu1 }
 0x130   :  { %283 = vst [vmem:[#allocation7] sm:$0xff] %v282_v23   ;;  %289 = vst [vmem:[#allocation7 + $0x8] sm:$0xff] %v287_v24  }
 0x131   :  { %395 = shalt.err (!%p392_p6)
}
 0x132   :  { %s396_s12 = scalar_lea.hbm %s479_s2, 256 }
 0x133   :  { %p397_p7 = scmp.ne.s32.totalorder %s479_s2, %s396_s12  ;;  %p400_p8 = scmp.lt.u32.totalorder %s396_s12, %s479_s2 }
 0x135   :  { %p402_p9 = pnand %p400_p8, %p397_p7 }
 0x137   :  { %405 = shalt.err (!%p402_p9)
}
 0x138   :  { %246 = dma.vmem_to_hbm [thread:$0]  %s241_s8, 256, %s479_s2, [#allocation4], %s416_s0, %s416_s0, %s417_s5  }
 0x139   :  { %410 = dma.done.wait [#allocation4], 256  }
 0x13a   :  { %411 = vsyncadd [#allocation4], 4294967040 }
 0x13b   :  { %250 = vsyncpa [#allocation3], 1 }
 0x13c   :  { %251 = vsyncpa [#allocation6], 1 }
 0x13d   :  { %252 = vsyncpa [#allocation4], 1 }

</bundles_post_ra>
